<compile_context>
chip_gen: v7x
topology: tpu7x:2x2x1
jax: 0.10.0
libtpu: 0.0.40
codegen_flags: <defaults>
</compile_context>

<pallas_src>
import jax
import jax.numpy as jnp
from jax.experimental import pallas as pl
from jax.experimental.pallas import tpu as pltpu


def value_net_kernel(x_ref, w1_ref, b1_ref, w2_ref, b2_ref, w3_ref, b3_ref, o_ref):
    # x_ref:  [Bt, S]   natural layout, HBM dtype (cast per-tile below)
    # w1_ref: [H, S]    compute dtype (bf16 by default)
    # w2_ref: [H, H]    compute dtype
    # w3_ref: [H, 1]    f32 column (VPU layer)
    # b*_ref: [out, 1]  f32
    # o_ref:  [1, Bt]   f32, lane-dense output
    x = x_ref[...].astype(w1_ref.dtype)  # small [Bt, S] cast, hidden under DMA

    # layer 1: contract S of w1 [H,S] against S of x [Bt,S]  ->  [H, Bt] (batch on lanes)
    h = jax.lax.dot_general(
        w1_ref[...], x,
        dimension_numbers=(((1,), (1,)), ((), ())),
        preferred_element_type=jnp.float32)
    h = jnp.maximum(h + b1_ref[...], 0.0)

    # layer 2: [H, H] @ [H, Bt] -> [H, Bt]
    h = jnp.dot(w2_ref[...], h.astype(w2_ref.dtype),
                preferred_element_type=jnp.float32)
    h = jnp.maximum(h + b2_ref[...], 0.0)

    # layer 3 on VPU + XLU: broadcast-mul by the w3 column and sublane-reduce over H.
    out = jnp.sum(w3_ref[...] * h, axis=0, keepdims=True)       # [1, Bt]
    o_ref[...] = (out + b3_ref[...]).astype(o_ref.dtype)


def _round_up(x, m):
    return (x + m - 1) // m * m


def _cdiv(a, b):
    return -(-a // b)


def _choose_batch_tile(B, S, H, x_itemsize):
    """Batch sits on the 128-lane axis -> tile is a multiple of 128.

    Sizing rules:
      * per-step x DMA <= ~4 MiB (amortizes ~0.35 us/step grid overhead)
      * per-step VMEM (x double-buffered + two [H,Bt] f32 intermediates + output
        double-buffered) <= ~10 MiB  -> safe under v5e's 16 MiB scoped-VMEM default
      * >= 4 grid steps when the batch allows it (>= 2 tiles per TensorCore on v7x)
    """
    b128 = _round_up(B, 128)
    per_lane = 2 * S * x_itemsize + 2 * H * 4 + 2 * 4
    cap = min(
        (10 << 20) // per_lane,          # VMEM budget
        (4 << 20) // (S * x_itemsize),   # ~4 MiB x DMA per grid step
    )
    cap = max(128, cap // 128 * 128)
    bt = min(b128, cap)
    if b128 >= 4 * 128:
        # at least 4 grid steps once the batch is big enough
        bt = min(bt, max(128, (b128 // 4) // 128 * 128))
    # spread the padded batch as evenly as possible over the resulting step count
    num_steps = _cdiv(b128, bt)
    bt = _round_up(_cdiv(b128, num_steps), 128)
    return bt


def value_net_forward(x, w1, b1, w2, b2, w3, b3, *, batch_tile=None,
                      compute_dtype=jnp.bfloat16):
    """x: [B, state_size]. Weights in PyTorch layout [out, in], biases [out, 1].
    Returns [B, 1] float32 (matches ValueNet.forward)."""
    B, S = x.shape
    H = w1.shape[0]

    if batch_tile is None:
        batch_tile = _choose_batch_tile(B, S, H, x.dtype.itemsize)
    assert batch_tile % 128 == 0, "lane-axis tile must be a multiple of 128"

    B_pad = _round_up(B, batch_tile)
    num_steps = B_pad // batch_tile
    if B_pad != B:
        # pad batch up to a whole number of lane tiles; padded rows are sliced off below
        x = jnp.pad(x, ((0, B_pad - B), (0, 0)))

    # MXU feeds in compute_dtype (bf16 default); epilogue + final VPU layer stay f32.
    # x keeps its HBM dtype and is cast per-tile inside the kernel (storing x as bf16
    # upstream would additionally halve the dominant HBM stream).
    w1c = w1.astype(compute_dtype)
    w2c = w2.astype(compute_dtype)
    w3_col = w3.reshape(H, 1).astype(jnp.float32)   # [1, H] -> [H, 1] column
    b1f, b2f, b3f = (b.astype(jnp.float32) for b in (b1, b2, b3))

    flops = 2 * B_pad * (S * H + H * H + H)
    bytes_accessed = (
        B_pad * S * x.dtype.itemsize
        + sum(int(a.size) * a.dtype.itemsize
              for a in (w1c, w2c, w3_col, b1f, b2f, b3f))
        + B_pad * 4)  # f32 output

    out = pl.pallas_call(
        value_net_kernel,
        out_shape=jax.ShapeDtypeStruct((1, B_pad), jnp.float32),
        grid_spec=pltpu.PrefetchScalarGridSpec(
            num_scalar_prefetch=0,
            grid=(num_steps,),
            in_specs=[
                pl.BlockSpec((batch_tile, S), lambda i: (i, 0)),  # x tile, natural layout
                pl.BlockSpec((H, S), lambda i: (0, 0)),           # W1 (grid-resident)
                pl.BlockSpec((H, 1), lambda i: (0, 0)),           # b1
                pl.BlockSpec((H, H), lambda i: (0, 0)),           # W2
                pl.BlockSpec((H, 1), lambda i: (0, 0)),           # b2
                pl.BlockSpec((H, 1), lambda i: (0, 0)),           # w3 column (VPU layer)
                pl.BlockSpec((1, 1), lambda i: (0, 0)),           # b3
            ],
            out_specs=pl.BlockSpec((1, batch_tile), lambda i: (0, i)),  # lane-dense
        ),
        compiler_params=pltpu.CompilerParams(
            dimension_semantics=("parallel",),   # batch tiles shard across TCs on v7x
        ),
        cost_estimate=pl.CostEstimate(
            flops=flops, transcendentals=0, bytes_accessed=int(bytes_accessed)),
    )(x, w1c, b1f, w2c, b2f, w3_col, b3f)

    # lane-dense [1, B_pad] slab -> [B, 1] to match ValueNet.forward's output shape.
    return out[0, :B].reshape(B, 1)


def init_params(key, state_size, hidden_dim):
    """Mimics nn.Linear's uniform(-1/sqrt(fan_in), 1/sqrt(fan_in)) init.
    Weights are PyTorch-native [out, in]; biases are [out, 1]."""
    ks = jax.random.split(key, 6)

    def linear(kw, kb, fan_in, fan_out):
        bound = 1.0 / float(fan_in) ** 0.5
        w = jax.random.uniform(kw, (fan_out, fan_in), jnp.float32, -bound, bound)
        b = jax.random.uniform(kb, (fan_out, 1), jnp.float32, -bound, bound)
        return w, b

    w1, b1 = linear(ks[0], ks[1], state_size, hidden_dim)
    w2, b2 = linear(ks[2], ks[3], hidden_dim, hidden_dim)
    w3, b3 = linear(ks[4], ks[5], hidden_dim, 1)
    return w1, b1, w2, b2, w3, b3


def reference_forward(x, w1, b1, w2, b2, w3, b3):
    h = jnp.maximum(x @ w1.T + b1.T, 0.0)
    h = jnp.maximum(h @ w2.T + b2.T, 0.0)
    return h @ w3.T + b3.T


if __name__ == "__main__":
    key = jax.random.PRNGKey(0)
    k_x, k_p, k_x2 = jax.random.split(key, 3)

    state_size = 16
    hidden_dim = 32   # stand-in for CFG_DICT['ACTOR_CRITIC']['VALUE_HIDDEN_DIM']
    batch = 512       # -> batch_tile=128, grid=(4,) : exercises the pipelined path

    x = jax.random.normal(k_x, (batch, state_size), jnp.float32)
    params = init_params(k_p, state_size, hidden_dim)
    ref = reference_forward(x, *params)

    # f32 MXU-feed path (tight check).
    out_f32 = jax.block_until_ready(
        value_net_forward(x, *params, compute_dtype=jnp.float32))
    assert out_f32.shape == (batch, 1)
    assert jnp.allclose(out_f32, ref, atol=1e-4, rtol=1e-4), "f32 kernel mismatch vs reference"

    # Default path: bf16 MXU feeds, f32 accumulation + f32 epilogue (looser check).
    out_bf16 = jax.block_until_ready(value_net_forward(x, *params))
    assert out_bf16.shape == (batch, 1)
    assert jnp.allclose(out_bf16, ref, atol=5e-2, rtol=5e-2), "bf16 kernel mismatch vs reference"

    # Ragged batch: exercises the pad-to-tile path.
    x2 = jax.random.normal(k_x2, (77, state_size), jnp.float32)
    out_pad = jax.block_until_ready(
        value_net_forward(x2, *params, compute_dtype=jnp.float32))
    assert out_pad.shape == (77, 1)
    assert jnp.allclose(out_pad, reference_forward(x2, *params), atol=1e-4, rtol=1e-4), \
        "padded-batch kernel mismatch vs reference"

    print("KERNEL_OK")
</pallas_src>

<mosaic_0001>
module attributes {stable_mosaic.version = 11 : i64} {
  func.func @value_net_kernel(%arg0: i32, %arg1: memref<128x16xf32, #tpu.memory_space<vmem>>, %arg2: memref<32x16xf32, #tpu.memory_space<vmem>>, %arg3: memref<32x1xf32, #tpu.memory_space<vmem>>, %arg4: memref<32x32xf32, #tpu.memory_space<vmem>>, %arg5: memref<32x1xf32, #tpu.memory_space<vmem>>, %arg6: memref<32x1xf32, #tpu.memory_space<vmem>>, %arg7: memref<1x1xf32, #tpu.memory_space<vmem>>, %arg8: memref<1x128xf32, #tpu.memory_space<vmem>>) attributes {dimension_semantics = [#tpu.dimension_semantics<parallel>], iteration_bounds = array<i64: 4>, scalar_prefetch = 0 : i64, scratch_operands = 0 : i64, tpu.core_type = #tpu.core_type<tc>, window_params = [{transform_indices = @transform_0, window_bounds = array<i64: 128, 16>}, {pipeline_mode = #tpu.pipeline_mode<synchronous>, transform_indices = @transform_1, window_bounds = array<i64: 32, 16>}, {pipeline_mode = #tpu.pipeline_mode<synchronous>, transform_indices = @transform_2, window_bounds = array<i64: 32, 1>}, {pipeline_mode = #tpu.pipeline_mode<synchronous>, transform_indices = @transform_3, window_bounds = array<i64: 32, 32>}, {pipeline_mode = #tpu.pipeline_mode<synchronous>, transform_indices = @transform_4, window_bounds = array<i64: 32, 1>}, {pipeline_mode = #tpu.pipeline_mode<synchronous>, transform_indices = @transform_5, window_bounds = array<i64: 32, 1>}, {pipeline_mode = #tpu.pipeline_mode<synchronous>, transform_indices = @transform_6, window_bounds = array<i64: 1, 1>}, {transform_indices = @transform_7, window_bounds = array<i64: 1, 128>}]} {
    %c0 = arith.constant 0 : index
    %c0_0 = arith.constant 0 : index
    %0 = vector.load %arg1[%c0, %c0_0] : memref<128x16xf32, #tpu.memory_space<vmem>>, vector<128x16xf32>
    %c0_1 = arith.constant 0 : index
    %c0_2 = arith.constant 0 : index
    %1 = vector.load %arg2[%c0_1, %c0_2] : memref<32x16xf32, #tpu.memory_space<vmem>>, vector<32x16xf32>
    %cst = arith.constant dense<0.000000e+00> : vector<32x128xf32>
    %2 = tpu.matmul %1, %0, %cst {dimension_numbers = #tpu.dot_dimension_numbers<[1], [1], [0], [0], [0, 0, 1, 0], [], []>} : vector<32x16xf32>, vector<128x16xf32>, vector<32x128xf32> -> vector<32x128xf32>
    %c0_3 = arith.constant 0 : index
    %c0_4 = arith.constant 0 : index
    %3 = vector.load %arg3[%c0_3, %c0_4] : memref<32x1xf32, #tpu.memory_space<vmem>>, vector<32x1xf32>
    %4 = vector.broadcast %3 : vector<32x1xf32> to vector<32x128xf32>
    %5 = arith.addf %2, %4 : vector<32x128xf32>
    %cst_5 = arith.constant 0.000000e+00 : f32
    %6 = vector.broadcast %cst_5 : f32 to vector<32x128xf32>
    %7 = arith.maximumf %5, %6 : vector<32x128xf32>
    %c0_6 = arith.constant 0 : index
    %c0_7 = arith.constant 0 : index
    %8 = vector.load %arg4[%c0_6, %c0_7] : memref<32x32xf32, #tpu.memory_space<vmem>>, vector<32x32xf32>
    %cst_8 = arith.constant dense<0.000000e+00> : vector<32x128xf32>
    %9 = tpu.matmul %8, %7, %cst_8 {dimension_numbers = #tpu.dot_dimension_numbers<[1], [0], [0], [1], [0, 0, 1, 1], [], []>} : vector<32x32xf32>, vector<32x128xf32>, vector<32x128xf32> -> vector<32x128xf32>
    %c0_9 = arith.constant 0 : index
    %c0_10 = arith.constant 0 : index
    %10 = vector.load %arg5[%c0_9, %c0_10] : memref<32x1xf32, #tpu.memory_space<vmem>>, vector<32x1xf32>
    %11 = vector.broadcast %10 : vector<32x1xf32> to vector<32x128xf32>
    %12 = arith.addf %9, %11 : vector<32x128xf32>
    %cst_11 = arith.constant 0.000000e+00 : f32
    %13 = vector.broadcast %cst_11 : f32 to vector<32x128xf32>
    %14 = arith.maximumf %12, %13 : vector<32x128xf32>
    %c0_12 = arith.constant 0 : index
    %c0_13 = arith.constant 0 : index
    %15 = vector.load %arg6[%c0_12, %c0_13] : memref<32x1xf32, #tpu.memory_space<vmem>>, vector<32x1xf32>
    %16 = vector.broadcast %15 : vector<32x1xf32> to vector<32x128xf32>
    %17 = arith.mulf %16, %14 : vector<32x128xf32>
    %cst_14 = arith.constant dense<0.000000e+00> : vector<128xf32>
    %18 = vector.multi_reduction <add>, %17, %cst_14 [0] : vector<32x128xf32> to vector<128xf32>
    %19 = vector.shape_cast %18 : vector<128xf32> to vector<1x128xf32>
    %c0_15 = arith.constant 0 : index
    %c0_16 = arith.constant 0 : index
    %20 = vector.load %arg7[%c0_15, %c0_16] : memref<1x1xf32, #tpu.memory_space<vmem>>, vector<1x1xf32>
    %21 = vector.broadcast %20 : vector<1x1xf32> to vector<1x128xf32>
    %22 = arith.addf %19, %21 : vector<1x128xf32>
    %c0_17 = arith.constant 0 : index
    %c0_18 = arith.constant 0 : index
    %23 = vector.load %arg8[%c0_17, %c0_18] : memref<1x128xf32, #tpu.memory_space<vmem>>, vector<1x128xf32>
    tpu.vector_store %arg8[%c0_17, %c0_18], %22 {strides = array<i32>} : memref<1x128xf32, #tpu.memory_space<vmem>>, vector<1x128xf32>,
    return
  }
  func.func @transform_0(%arg0: i32) -> (i32, i32) {
    %c0_i32 = arith.constant 0 : i32
    %c0_i32_0 = arith.constant 0 : i32
    return %arg0, %c0_i32 : i32, i32
  }
  func.func @transform_1(%arg0: i32) -> (i32, i32) {
    %c0_i32 = arith.constant 0 : i32
    %c0_i32_0 = arith.constant 0 : i32
    %c0_i32_1 = arith.constant 0 : i32
    return %c0_i32, %c0_i32_0 : i32, i32
  }
  func.func @transform_2(%arg0: i32) -> (i32, i32) {
    %c0_i32 = arith.constant 0 : i32
    %c0_i32_0 = arith.constant 0 : i32
    %c0_i32_1 = arith.constant 0 : i32
    return %c0_i32, %c0_i32_0 : i32, i32
  }
  func.func @transform_3(%arg0: i32) -> (i32, i32) {
    %c0_i32 = arith.constant 0 : i32
    %c0_i32_0 = arith.constant 0 : i32
    %c0_i32_1 = arith.constant 0 : i32
    return %c0_i32, %c0_i32_0 : i32, i32
  }
  func.func @transform_4(%arg0: i32) -> (i32, i32) {
    %c0_i32 = arith.constant 0 : i32
    %c0_i32_0 = arith.constant 0 : i32
    %c0_i32_1 = arith.constant 0 : i32
    return %c0_i32, %c0_i32_0 : i32, i32
  }
  func.func @transform_5(%arg0: i32) -> (i32, i32) {
    %c0_i32 = arith.constant 0 : i32
    %c0_i32_0 = arith.constant 0 : i32
    %c0_i32_1 = arith.constant 0 : i32
    return %c0_i32, %c0_i32_0 : i32, i32
  }
  func.func @transform_6(%arg0: i32) -> (i32, i32) {
    %c0_i32 = arith.constant 0 : i32
    %c0_i32_0 = arith.constant 0 : i32
    %c0_i32_1 = arith.constant 0 : i32
    return %c0_i32, %c0_i32_0 : i32, i32
  }
  func.func @transform_7(%arg0: i32) -> (i32, i32) {
    %c0_i32 = arith.constant 0 : i32
    %c0_i32_0 = arith.constant 0 : i32
    return %c0_i32, %arg0 : i32, i32
  }
}

</mosaic_0001>

<bundles_post_ra>
// kernel: tpu_custom_call.1
= control target key start
LH: loop header
LB: loop body
LE: loop exit
PB: predicated region body
PF: predicated region fallthrough
CT: control target
= control target key end

     0   :  { %s1264_s0 = inlined_call_operand.vmem [shape: f32[512,16], index: 0, kind: input, shape index: {}]   ;;  %s1265_s1 = inlined_call_operand.vmem [shape: f32[32,16], index: 1, kind: input, shape index: {}]   ;;  %s1266_s2 = inlined_call_operand.vmem [shape: f32[32,1], index: 2, kind: input, shape index: {}]   ;;  %s1267_s3 = inlined_call_operand.vmem [shape: f32[32,32], index: 3, kind: input, shape index: {}]   ;;  %s1268_s4 = inlined_call_operand.vmem [shape: f32[32,1], index: 4, kind: input, shape index: {}]   ;;  %s1269_s5 = inlined_call_operand.vmem [shape: f32[32,1], index: 5, kind: input, shape index: {}]   ;;  %s1270_s6 = inlined_call_operand.<no memory space> [shape: f32[1,1], index: 6, kind: input, shape index: {}]   ;;  %s1271_s7 = inlined_call_operand.hbm [shape: f32[1,512], index: 7, kind: output, shape index: {}]  }
   0x1   :  { %v12_v0 = vstv %s1270_s6 }
   0x2   :  { %13 = vst [vmem:[#allocation2] sm:$0x1] %v12_v0 }
   0x3   :  { %14 = vsyncpa [#allocation4], 0 }
   0x4   :  { %16 = vsyncpa [#allocation4 + $0x1], 0  ;;  %s1041_s26 = smov 0   ;;  %s1043_s27 = smov 0  }
   0x5   :  { %s1045_s28 = smov 0   ;;  %s1047_s29 = smov 0  }
   0x6 LB: > { %s720_s6 = sadd.s32 4294967295, %s994_s29   ;;  %s721_s30 = sadd.s32 4294967294, %s994_s29   ;;  %s994_s29 = sphi %s1047_s29, %s1279_s29   ;;  %s990_s28 = sphi %s1045_s28, %s1278_s28   ;;  %s986_s27 = sphi %s1043_s27, %s1277_s27   ;;  %s982_s26 = sphi %s1041_s26, %s1276_s26  }
   0x7   : > { %s1064_s8 = sadd.s32 1, %s994_s29   ;;  %s181_s9 = sadd.s32 1, %s990_s28 }
   0x8   : > { %s178_s10 = ssub.s32 %s994_s29, %s1064_s8  ;;  %p191_p0 = scmp.ne.s32.totalorder %s990_s28, %s986_s27 }
   0x9   : > { %p179_p1 = scmp.eq.s32.totalorder %s178_s10, 0  ;;  %p192_p2 = scmp.eq.s32.totalorder %s720_s6, 3 }
   0xa   : > { %p197_p3 = scmp.ne.s32.totalorder %s986_s27, %s982_s26  ;;  %p198_p4 = scmp.eq.s32.totalorder %s721_s30, 3 }
   0xb   : > { %s1074_s11 = scalar_select %p179_p1, %s990_s28, %s181_s9  }
   0xc   : > { %p1076_p5 = por %p192_p2, %p191_p0  ;;  %p1080_p6 = por %p198_p4, %p197_p3 }
   0xd   : > { %p724_p7 = scmp.ge.s32.totalorder %s994_s29, 1  ;;  %p243_p8 = scmp.lt.s32.totalorder %s994_s29, 5 }
   0xf   : > { %p244_p9 = pnand %p724_p7, %p243_p8 }
  0x10   : > { %s1086_s14 = sshll.u32 (!%p244_p9), %s720_s6, 4  ;;  %vm324_vm0 = vcmask (!%p244_p9), 130048   ;;  %v296_v1 = vld [vmem:[%s1265_s1] sm:$0xff] (!%p244_p9)  ;;  %v996_v2 = vmov (!%p244_p9), 0   ;;  %v302_v4 = vld [vmem:[%s1266_s2 + $0x10] sm:$0xff] (!%p244_p9)  ;;  %v301_v5 = vld [vmem:[%s1266_s2 + $0x8] sm:$0xff] (!%p244_p9) }
  0x11   : > { %247 = sbr.rel (%p244_p9) target bundleno = 577 (0x241), region = 48  ;;  %p275_p10 = scmp.lt.s32.totalorder (!%p244_p9), %s1086_s14, 63  ;;  %814 = vmatprep.mubr.msk.f32.mxu0 (!%p244_p9), %vm324_vm0, %v296_v1  ;;  %930 = vset.pattern.permute.xlu0 (!%p244_p9), %v996_v2  ;;  %v300_v3 = vld [vmem:[%s1266_s2] sm:$0xff] (!%p244_p9)  ;;  %v303_v6 = vld [vmem:[%s1266_s2 + $0x18] sm:$0xff] (!%p244_p9)  ;;  %vm1113_vm1 = vmpackc.low (!%p244_p9), %vm324_vm0, %vm324_vm0  ;;  %vm502_vm2 = vcmask (!%p244_p9), 261120  }
  0x12   : > { %306 = vperm.xlu0 (!%p244_p9), %930, %v300_v3   ;;  %931 = vset.pattern.permute.xlu1 (!%p244_p9), %v996_v2  ;;  %v478_v8 = vld [vmem:[%s1268_s4] sm:$0xff] (!%p244_p9)  ;;  %v479_v14 = vld [vmem:[%s1268_s4 + $0x8] sm:$0xff] (!%p244_p9)  ;;  %v480_v16 = vld [vmem:[%s1268_s4 + $0x10] sm:$0xff] (!%p244_p9)  ;;  %s272_s16 = sand.u32 (!%p244_p9), 1, %s986_s27   ;;  %s997_s23 = smov (!%p244_p9), [#allocation3]  }
  0x13   : > { %316 = vperm.xlu1 (!%p244_p9), %931, %v302_v4   ;;  %v481_v17 = vld [vmem:[%s1268_s4 + $0x18] sm:$0xff] (!%p244_p9)  ;;  %v604_v20 = vld [vmem:[%s1269_s5] sm:$0xff] (!%p244_p9)  ;;  %v605_v22 = vld [vmem:[%s1269_s5 + $0x8] sm:$0xff] (!%p244_p9)  ;;  %s273_s17 = scalar_lea.vmem (!%p244_p9), [#allocation3], %s272_s16  ;;  %s936_s24 = sshll.u32 (!%p244_p9), %s997_s23, 4  ;;  %s937_s24 = int_to_ptr.vmem [resolvable:$false] %s936_s24 }
  0x14   : > { %v606_v23 = vld [vmem:[%s1269_s5 + $0x10] sm:$0xff] (!%p244_p9)  ;;  %v607_v24 = vld [vmem:[%s1269_s5 + $0x18] sm:$0xff] (!%p244_p9)  ;;  %v641_v27 = vld [vmem:[#allocation2] sm:$0x1] (!%p244_p9)  ;;  %s666_s18 = sshll.u32 (!%p244_p9), %s273_s17, 4  ;;  %s938_s25 = scalar_lea.vmem (!%p244_p9), %s937_s24, 32  ;;  %s1224_s18 = int_to_ptr.vmem [resolvable:$true] %s666_s18 }
  0x15   : > { %v297_v41 = vld [vmem:[%s1265_s1 + $0x8] sm:$0xff] (!%p244_p9)  ;;  %v298_v42 = vld [vmem:[%s1265_s1 + $0x10] sm:$0xff] (!%p244_p9)  ;;  %v299_v43 = vld [vmem:[%s1265_s1 + $0x18] sm:$0xff] (!%p244_p9)  ;;  %s932_s22 = scalar_lea.vmem (!%p244_p9), %s1224_s18, 16  ;;  %p939_p0 = scmp.lt.s32.totalorder (!%p244_p9), %s1224_s18, %s937_s24 }
  0x16   : > { %311 = vperm.xlu0 (!%p244_p9), %930, %v301_v5   ;;  %v474_v44 = vld [vmem:[%s1267_s3] sm:$0xff] (!%p244_p9)  ;;  %v475_v63 = vld [vmem:[%s1267_s3 + $0x8] sm:$0xff] (!%p244_p9)  ;;  %v476_v0 = vld [vmem:[%s1267_s3 + $0x10] sm:$0xff] (!%p244_p9)  ;;  %p933_p11 = scmp.ne.s32.totalorder (!%p244_p9), %s1224_s18, %s932_s22  ;;  %p940_p1 = scmp.lt.s32.totalorder (!%p244_p9), %s938_s25, %s932_s22 }
  0x17   : > { %321 = vperm.xlu1 (!%p244_p9), %931, %v303_v6   ;;  %828 = vmatprep.mubr.msk.f32.mxu1 (!%p244_p9), %vm502_vm2, %v474_v44  ;;  %v477_v1 = vld [vmem:[%s1267_s3 + $0x18] sm:$0xff] (!%p244_p9) }
  0x18   : > { %s276_s21 = scalar_select %p275_p10, %s1086_s14, 63 }
  0x19   : > { %p934_p12 = pnand %p933_p11, %p1076_p5  ;;  %p941_p2 = por %p940_p1, %p939_p0 }
  0x1a   : > { %s726_s6 = sshll.u32 %s276_s21, 3  ;;  %484 = vperm.xlu0 %930, %v478_v8   ;;  %s654_s21 = scalar_lea.sflag [#allocation4], %s272_s16 }
  0x1b   : > { %s1109_s10 = scalar_lea.vmem %s1264_s0, %s726_s6  ;;  %489 = vperm.xlu1 %931, %v479_v14   ;;  %p935_p13 = pneg %p934_p12 }
  0x1c   : > { %v280_v9 = vld [vmem:[%s1109_s10] sm:$0xff]  ;;  %v281_v10 = vld [vmem:[%s1109_s10 + $0x8] sm:$0xff]  ;;  %v282_v11 = vld [vmem:[%s1109_s10 + $0x10] sm:$0xff] }
  0x1d   : > { %v834_v12 = vpack.c.bf16 %v281_v10, %v280_v9  ;;  %v283_v13 = vld [vmem:[%s1109_s10 + $0x18] sm:$0xff]  ;;  %v284_v18 = vld [vmem:[%s1109_s10 + $0x20] sm:$0xff]  ;;  %v285_v19 = vld [vmem:[%s1109_s10 + $0x28] sm:$0xff]  ;;  %p942_p3 = pnand %p941_p2, %p935_p13 }
  0x1e   : > { %v840_v15 = vpack.c.bf16 %v283_v13, %v282_v11  ;;  %494 = vperm.xlu0 %930, %v480_v16   ;;  %v846_v21 = vpack.c.bf16 %v285_v19, %v284_v18  ;;  %v286_v25 = vld [vmem:[%s1109_s10 + $0x30] sm:$0xff]  ;;  %v287_v26 = vld [vmem:[%s1109_s10 + $0x38] sm:$0xff]  ;;  %v288_v29 = vld [vmem:[%s1109_s10 + $0x40] sm:$0xff] }
  0x1f   : > { %836 = vmatprep.subr.msk.bf16.mxu0 %vm1113_vm1, %v834_v12  ;;  %499 = vperm.xlu1 %931, %v481_v17   ;;  %v852_v28 = vpack.c.bf16 %v287_v26, %v286_v25  ;;  %v289_v30 = vld [vmem:[%s1109_s10 + $0x48] sm:$0xff]  ;;  %v290_v32 = vld [vmem:[%s1109_s10 + $0x50] sm:$0xff]  ;;  %v291_v33 = vld [vmem:[%s1109_s10 + $0x58] sm:$0xff] }
  0x20   : > { %839 = vmatpush3.bf16.xpose.msk.msra.mxu0 %vm1113_vm1, %v834_v12  ;;  %v858_v31 = vpack.c.bf16 %v289_v30, %v288_v29  ;;  %v864_v34 = vpack.c.bf16 %v291_v33, %v290_v32  ;;  %v292_v35 = vld [vmem:[%s1109_s10 + $0x60] sm:$0xff]  ;;  %v293_v36 = vld [vmem:[%s1109_s10 + $0x68] sm:$0xff]  ;;  %v294_v38 = vld [vmem:[%s1109_s10 + $0x70] sm:$0xff] }
  0x21   : > { %842 = vmatprep.subr.msk.bf16.mxu0 %vm1113_vm1, %v840_v15  ;;  %v870_v37 = vpack.c.bf16 %v293_v36, %v292_v35  ;;  %v295_v39 = vld [vmem:[%s1109_s10 + $0x78] sm:$0xff]  ;;  %s1222_s10 = scalar_lea.hbm %s1271_s7, %s1086_s14 }
  0x22   : > { %610 = vperm.xlu0 %930, %v604_v20   ;;  %v876_v40 = vpack.c.bf16 %v295_v39, %v294_v38 }
  0x23   : > { %615 = vperm.xlu1 %931, %v605_v22  }
  0x26   : > { %620 = vperm.xlu0 %930, %v606_v23  }
  0x27   : > { %625 = vperm.xlu1 %931, %v607_v24  }
  0x28   : > { %845 = vmatpush3.bf16.xpose.msk.msra.mxu0 %vm1113_vm1, %v840_v15 }
  0x29   : > { %848 = vmatprep.subr.msk.bf16.mxu0 %vm1113_vm1, %v846_v21 }
  0x2a   : > { %644 = vperm.xlu0 %930, %v641_v27  }
  0x30   : > { %851 = vmatpush3.bf16.xpose.msk.msra.mxu0 %vm1113_vm1, %v846_v21 }
  0x31   : > { %854 = vmatprep.subr.msk.bf16.mxu0 %vm1113_vm1, %v852_v28 }
  0x38   : > { %857 = vmatpush3.bf16.xpose.msk.msra.mxu0 %vm1113_vm1, %v852_v28  ;;  %v647_v28 = vlaneseq }
  0x39   : > { %860 = vmatprep.subr.msk.bf16.mxu0 %vm1113_vm1, %v858_v31 }
  0x40   : > { %863 = vmatpush3.bf16.xpose.msk.msra.mxu0 %vm1113_vm1, %v858_v31  ;;  %v648_v31 = vshrl.u32 %v647_v28, 7 }
  0x41   : > { %866 = vmatprep.subr.msk.bf16.mxu0 %vm1113_vm1, %v864_v34 }
  0x48   : > { %869 = vmatpush3.bf16.xpose.msk.msra.mxu0 %vm1113_vm1, %v864_v34  ;;  %v649_v34 = vsub.s32 0, %v648_v31 }
  0x49   : > { %872 = vmatprep.subr.msk.bf16.mxu0 %vm1113_vm1, %v870_v37 }
  0x50   : > { %875 = vmatpush3.bf16.xpose.msk.msra.mxu0 %vm1113_vm1, %v870_v37 }
  0x51   : > { %878 = vmatprep.subr.msk.bf16.mxu0 %vm1113_vm1, %v876_v40 }
  0x58   : > { %881 = vmatpush3.bf16.xpose.msk.msra.mxu0 %vm1113_vm1, %v876_v40 }
  0x5f   : > { %815 = vmatmul.mubr.msk.f32.vlgmr.msra.gmra.mrb[0].mxu0 %vm324_vm0, %v297_v41 }
  0x60   : > { %817 = vmatprep.mubr.msk.f32.mxu0 %vm324_vm0, %v298_v42 }
  0x63   : > { %818 = vmatmul.mubr.msk.f32.gmra.mrb[2].mxu0 %vm324_vm0, %v299_v43 }
  0x91   : > { %v307_v45 = vpop.permute.xlu0 %306 }
  0x92   : > { %v317_v46 = vpop.permute.xlu1 %316 }
  0x95   : > { %v312_v47 = vpop.permute.xlu0 %311 }
  0x96   : > { %v322_v53 = vpop.permute.xlu1 %321 }
  0x99   : > { %v485_v2 = vpop.permute.xlu0 %484 }
  0x9a   : > { %v490_v3 = vpop.permute.xlu1 %489 }
  0x9d   : > { %v495_v4 = vpop.permute.xlu0 %494 }
  0x9e   : > { %v500_v5 = vpop.permute.xlu1 %499 }
  0xa1   : > { %v611_v10 = vpop.permute.xlu0 %610 }
  0xa2   : > { %v616_v12 = vpop.permute.xlu1 %615 }
  0xa5   : > { %v621_v23 = vpop.permute.xlu0 %620 }
  0xa6   : > { %v626_v25 = vpop.permute.xlu1 %625 }
  0xa9   : > { %v645_v36 = vpop.permute.xlu0 %644 }
  0xaa   : > { %v650_v38 = vrot.slane %v645_v36, %v649_v34 }
 0x132   : > { %v816_v48 = vpop.f32.mrb[0].mxu0 }
 0x133   : > { %v457_v49 = vadd.f32 %v816_v48, %v312_v47  ;;  %v451_v50 = vpop.f32.mrb[1].mxu0 }
 0x134   : > { %v452_v51 = vadd.f32 %v451_v50, %v307_v45 }
 0x135   : > { %v471_v52 = vmax.f32 %v457_v49, 0.0 }
 0x136   : > { %v470_v54 = vmax.f32 %v452_v51, 0.0  ;;  %v819_v55 = vpop.f32.mrb[2].mxu0 }
 0x137   : > { %v467_v56 = vadd.f32 %v819_v55, %v322_v53  ;;  %v461_v57 = vpop.f32.mrb[3].mxu0 }
 0x138   : > { %v462_v58 = vadd.f32 %v461_v57, %v317_v46  ;;  %v882_v59 = vpack.c.bf16 %v471_v52, %v470_v54 }
 0x139   : > { %v473_v60 = vmax.f32 %v467_v56, 0.0 }
 0x13a   : > { %v472_v61 = vmax.f32 %v462_v58, 0.0  ;;  %883 = vmatprep.subr.bf16.mxu1 %v882_v59 }
 0x13b   : > { %885 = vmatpush3.bf16.msra.mxu1 %v882_v59 }
 0x13c   : > { %v886_v62 = vpack.c.bf16 %v473_v60, %v472_v61 }
 0x13e   : > { %887 = vmatprep.subr.bf16.mxu1 %v886_v62 }
 0x13f   : > { %889 = vmatpush3.bf16.msra.mxu1 %v886_v62 }
 0x142   : > { %829 = vmatmul.mubr.msk.f32.vlgmr.msra.gmra.mrb[0].mxu1 %vm502_vm2, %v475_v63 }
 0x143   : > { %831 = vmatprep.mubr.msk.f32.mxu1 %vm502_vm2, %v476_v0 }
 0x146   : > { %832 = vmatmul.mubr.msk.f32.gmra.mrb[2].mxu1 %vm502_vm2, %v477_v1 }
 0x215   : > { %v830_v6 = vpop.f32.mrb[0].mxu1 }
 0x216   : > { %v587_v7 = vadd.f32 %v830_v6, %v490_v3  ;;  %v581_v8 = vpop.f32.mrb[1].mxu1 }
 0x217   : > { %v582_v9 = vadd.f32 %v581_v8, %v485_v2 }
 0x218   : > { %v601_v11 = vmax.f32 %v587_v7, 0.0 }
 0x219   : > { %v600_v13 = vmax.f32 %v582_v9, 0.0  ;;  %v833_v14 = vpop.f32.mrb[2].mxu1 }
 0x21a   : > { %v629_v15 = vmul.f32 %v616_v12, %v601_v11  ;;  %v597_v16 = vadd.f32 %v833_v14, %v500_v5  ;;  %v591_v17 = vpop.f32.mrb[3].mxu1 }
 0x21b   : > { %v628_v18 = vmul.f32 %v611_v10, %v600_v13  ;;  %v592_v19 = vadd.f32 %v591_v17, %v495_v4 }
 0x21c   : > { %v603_v21 = vmax.f32 %v597_v16, 0.0 }
 0x21d   : > { %v632_v20 = vadd.f32 %v629_v15, %v628_v18  ;;  %v602_v22 = vmax.f32 %v592_v19, 0.0 }
 0x21e   : > { %v631_v26 = vmul.f32 %v626_v25, %v603_v21 }
 0x21f   : > { %v630_v24 = vmul.f32 %v621_v23, %v602_v22 }
 0x221   : > { %v633_v27 = vadd.f32 %v632_v20, %v630_v24 }
 0x223   : > { %v634_v29 = vadd.f32 %v633_v27, %v631_v26 }
 0x225   : > { %v635_v30 = vrot.slane %v634_v29, 4 }
 0x227   : > { %v636_v32 = vadd.f32 %v635_v30, %v634_v29 }
 0x229   : > { %v637_v33 = vrot.slane %v636_v32, 2 }
 0x22b   : > { %v638_v35 = vadd.f32 %v637_v33, %v636_v32 }
 0x22d   : > { %v639_v37 = vrot.slane %v638_v35, 1 }
 0x22f   : > { %v640_v39 = vadd.f32 %v639_v37, %v638_v35 }
 0x231   : > { %v651_v40 = vadd.f32 %v650_v38, %v640_v39 }
 0x233   : > { %652 = vst [vmem:[%s273_s17] sm:$0x1] %v651_v40 }
 0x234   : > { %945 = shalt.err (!%p942_p3)
}
 0x235   : > { %s946_s14 = scalar_lea.hbm %s1222_s10, 16  ;;  %s950_s9 = scalar_lea.hbm %s1271_s7, 64 }
 0x236   : > { %p947_p4 = scmp.ne.s32.totalorder %s1222_s10, %s946_s14  ;;  %p951_p9 = scmp.lt.u32.totalorder %s1222_s10, %s1271_s7 }
 0x237   : > { %p952_p10 = scmp.lt.u32.totalorder %s950_s9, %s946_s14  ;;  %p954_p12 = scmp.lt.u32.totalorder %s946_s14, %s1222_s10 }
 0x238   : > { %p948_p7 = pnand %p947_p4, %p1076_p5 }
 0x239   : > { %p953_p11 = por %p952_p10, %p951_p9 }
 0x23a   : > { %p949_p8 = pneg %p948_p7 }
 0x23b   : > { %p955_p13 = por %p954_p12, %p953_p11 }
 0x23d   : > { %p956_p0 = pnand %p955_p13, %p949_p8 }
 0x23f   : > { %959 = shalt.err (!%p956_p0)
}
 0x240   : > { %890 = dma.vmem_to_hbm [thread:$0]  (%p1076_p5), %s1224_s18, 16, %s1222_s10, %s654_s21  }
 0x241 PF: > { %p896_p1 = scmp.ge.s32.totalorder %s994_s29, 2  ;;  %s678_s17 = sand.u32 1, %s982_s26  }
 0x242   : > { %s679_s19 = scalar_lea.sflag [#allocation4], %s678_s17 }
 0x243   : > { %p893_p2 = pnand %p896_p1, %p1080_p6 }
 0x245   : > { %977 = dma.done.wait (!%p893_p2), %s679_s19, 16  }
 0x246   : > { %979 = vsyncadd (!%p893_p2), %s679_s19, 4294967280  ;;  %p19_p3 = scmp.ge.s32.totalorder %s1064_s8, 6   ;;  %s1276_s26 = smov %s986_s27 }
 0x247   : > { %s1277_s27 = smov %s990_s28  ;;  %s1278_s28 = smov %s1074_s11 }
 0x248   : > { %s1279_s29 = smov %s1064_s8  ;;  %21 = sbr.rel (!%p19_p3) target bundleno = 6 (0x6), region = 83 }
 0x24f   :  { %683 = vsyncpa [#allocation4], 1 }
 0x250   :  { %685 = vsyncpa [#allocation4 + $0x1], 1 }

</bundles_post_ra>
